<compile_context>
chip_gen: v7x
topology: tpu7x:2x2x1
jax: 0.10.0
libtpu: 0.0.40
codegen_flags: <defaults>
</compile_context>

<pallas_src>
import functools

import jax
import jax.numpy as jnp
from jax.experimental import pallas as pl
from jax.experimental.pallas import tpu as pltpu

BN_EPS = 1e-5
LANE = 128
SUBLANE = 8


def _round_up(x, m):
    return (x + m - 1) // m * m


# ---------------------------------------------------------------------------
# Kernel 1: conv-as-matmul (bf16 in, f32 accum) + per-tile BN partial stats.
# grid = (M tiles [parallel], K tiles [arbitrary / reduction]).
# ---------------------------------------------------------------------------
def _conv_stats_kernel(p_ref, w_ref, y_ref, sum_ref, sumsq_ref):
    k = pl.program_id(1)

    @pl.when(k == 0)
    def _init():
        y_ref[...] = jnp.zeros_like(y_ref)

    # (TM, TK) @ (TK, C_pad) on the MXU; f32 accumulation into the resident
    # output block (same output block index across the K axis).
    y_ref[...] += jnp.dot(p_ref[...], w_ref[...],
                          preferred_element_type=jnp.float32)

    @pl.when(k == pl.num_programs(1) - 1)
    def _finalize():
        y = y_ref[...]
        # Per-channel partial sums for this M tile.  Padded M rows are exactly
        # zero (zero patches -> zero conv rows), so they add nothing; the
        # wrapper divides by the true M.
        sum_ref[...] = jnp.sum(y, axis=0, keepdims=True)[None]
        sumsq_ref[...] = jnp.sum(y * y, axis=0, keepdims=True)[None]


# ---------------------------------------------------------------------------
# Kernel 2: fused BatchNorm apply (y * scale + shift) + ReLU, f32 epilogue.
# grid = (M tiles [parallel],).
# ---------------------------------------------------------------------------
def _bn_relu_kernel(y_ref, scale_ref, shift_ref, o_ref):
    o_ref[...] = jnp.maximum(
        y_ref[...] * scale_ref[...] + shift_ref[...], 0.0
    ).astype(o_ref.dtype)


def _im2col(x_nchw, kh, kw, stride, padding):
    """NCHW input -> (N*Ho*Wo, C_in*kh*kw) patches (c_in-major, then kh, kw)."""
    n, c, h, w = x_nchw.shape
    sh, sw = stride
    ph, pw = padding
    ho = (h + 2 * ph - kh) // sh + 1
    wo = (w + 2 * pw - kw) // sw + 1
    x = jnp.transpose(x_nchw, (0, 2, 3, 1))                        # NHWC
    x = jnp.pad(x, ((0, 0), (ph, ph), (pw, pw), (0, 0)))
    taps = []
    for i in range(kh):
        for j in range(kw):
            taps.append(x[:, i:i + ho * sh:sh, j:j + wo * sw:sw, :])  # (N,Ho,Wo,C)
    p = jnp.stack(taps, axis=-1)                                   # (N,Ho,Wo,C,kh*kw)
    p = p.reshape(n * ho * wo, c * kh * kw)                        # matches OIHW flatten
    return p, ho, wo


@functools.partial(jax.jit, static_argnames=("stride", "padding", "block_m"))
def conv_module_forward(x, weight, gamma, beta, *, stride=(1, 1), padding=(1, 1),
                        block_m=1024):
    """Forward of ConvModule(in_c, out_c, k, stride, padding, norm='BN', act='ReLU').

    x:      (N, C_in, H, W)        f32, NCHW
    weight: (C_out, C_in, KH, KW)  f32, PyTorch conv layout (bias=False)
    gamma/beta: (C_out,)           BN affine params
    returns (N, C_out, Ho, Wo)     f32, NCHW
    """
    n, c_in, _, _ = x.shape
    c_out, _, kh, kw = weight.shape

    patches, ho, wo = _im2col(x, kh, kw, stride, padding)          # (M, K) f32
    m = n * ho * wo
    k = c_in * kh * kw

    # Lane-dense / MXU-friendly padded shapes and tile sizes.
    c_pad = _round_up(c_out, LANE)
    k_pad = _round_up(k, LANE)
    tm = min(block_m, _round_up(m, SUBLANE))
    m_pad = _round_up(m, tm)
    tk = min(k_pad, 512)
    while k_pad % tk:
        tk -= LANE
    num_m = m_pad // tm
    num_k = k_pad // tk

    # bf16 MXU inputs, zero-padded (padded rows/cols contribute nothing).
    p_bf = jnp.pad(patches, ((0, m_pad - m), (0, k_pad - k))).astype(jnp.bfloat16)
    w_mat = weight.reshape(c_out, k).T                             # (K, C_out)
    w_bf = jnp.pad(w_mat, ((0, k_pad - k), (0, c_pad - c_out))).astype(jnp.bfloat16)

    cost1 = pl.CostEstimate(
        flops=2 * m_pad * k_pad * c_pad,
        transcendentals=0,
        bytes_accessed=p_bf.size * 2 + w_bf.size * 2 + m_pad * c_pad * 4,
    )
    y, psum, psumsq = pl.pallas_call(
        _conv_stats_kernel,
        out_shape=(
            jax.ShapeDtypeStruct((m_pad, c_pad), jnp.float32),      # conv output
            jax.ShapeDtypeStruct((num_m, 1, c_pad), jnp.float32),   # per-tile sum
            jax.ShapeDtypeStruct((num_m, 1, c_pad), jnp.float32),   # per-tile sumsq
        ),
        grid_spec=pltpu.PrefetchScalarGridSpec(
            num_scalar_prefetch=0,
            grid=(num_m, num_k),
            in_specs=[
                pl.BlockSpec((tm, tk), lambda i, kk: (i, kk)),      # patches tile
                pl.BlockSpec((tk, c_pad), lambda i, kk: (kk, 0)),   # weight tile
            ],
            out_specs=[
                pl.BlockSpec((tm, c_pad), lambda i, kk: (i, 0)),
                pl.BlockSpec((1, 1, c_pad), lambda i, kk: (i, 0, 0)),
                pl.BlockSpec((1, 1, c_pad), lambda i, kk: (i, 0, 0)),
            ],
        ),
        compiler_params=pltpu.CompilerParams(
            dimension_semantics=("parallel", "arbitrary"),
            vmem_limit_bytes=32 * 1024 * 1024,
        ),
        cost_estimate=cost1,
    )(p_bf, w_bf)

    # Cross-tile BN reduction -> per-channel affine (tiny; plain JAX, f32).
    # BatchNorm2d in training mode: batch mean / biased variance over N*Ho*Wo.
    inv_m = jnp.float32(1.0 / m)
    mean = jnp.sum(psum, axis=(0, 1)) * inv_m                       # (C_pad,)
    var = jnp.maximum(jnp.sum(psumsq, axis=(0, 1)) * inv_m - mean * mean, 0.0)
    inv_std = jax.lax.rsqrt(var + BN_EPS)
    gamma_p = jnp.pad(gamma.astype(jnp.float32), (0, c_pad - c_out))
    beta_p = jnp.pad(beta.astype(jnp.float32), (0, c_pad - c_out))
    scale = (gamma_p * inv_std).reshape(1, c_pad)
    shift = (beta_p - mean * gamma_p * inv_std).reshape(1, c_pad)

    cost2 = pl.CostEstimate(
        flops=3 * m_pad * c_pad,
        transcendentals=0,
        bytes_accessed=2 * m_pad * c_pad * 4,
    )
    out_flat = pl.pallas_call(
        _bn_relu_kernel,
        out_shape=jax.ShapeDtypeStruct((m_pad, c_pad), jnp.float32),
        grid_spec=pltpu.PrefetchScalarGridSpec(
            num_scalar_prefetch=0,
            grid=(num_m,),
            in_specs=[
                pl.BlockSpec((tm, c_pad), lambda i: (i, 0)),
                pl.BlockSpec((1, c_pad), lambda i: (0, 0)),
                pl.BlockSpec((1, c_pad), lambda i: (0, 0)),
            ],
            out_specs=pl.BlockSpec((tm, c_pad), lambda i: (i, 0)),
        ),
        compiler_params=pltpu.CompilerParams(
            dimension_semantics=("parallel",),
            vmem_limit_bytes=32 * 1024 * 1024,
        ),
        cost_estimate=cost2,
    )(y, scale, shift)

    # Slice off M / channel padding and return PyTorch-layout NCHW.
    out = out_flat[:m, :c_out].reshape(n, ho, wo, c_out).transpose(0, 3, 1, 2)
    return out


def _reference(x, weight, gamma, beta, stride, padding):
    """Plain-JAX reference using the same bf16 input rounding as the MXU path."""
    xb = x.astype(jnp.bfloat16).astype(jnp.float32)
    wb = weight.astype(jnp.bfloat16).astype(jnp.float32)
    y = jax.lax.conv_general_dilated(
        xb, wb, window_strides=stride, padding=[padding, padding],
        dimension_numbers=("NCHW", "OIHW", "NCHW"),
    )
    mean = jnp.mean(y, axis=(0, 2, 3), keepdims=True)
    var = jnp.var(y, axis=(0, 2, 3), keepdims=True)                 # biased, like torch BN
    y = (y - mean) * jax.lax.rsqrt(var + BN_EPS)
    y = y * gamma.reshape(1, -1, 1, 1) + beta.reshape(1, -1, 1, 1)
    return jnp.maximum(y, 0.0)


if __name__ == "__main__":
    # Small shapes consistent with the module: ConvModule(4, 8, 3, padding=1).
    N, C_IN, H, W = 2, 4, 16, 16
    C_OUT, KH, KW = 8, 3, 3
    STRIDE = (1, 1)
    PADDING = (1, 1)

    key = jax.random.PRNGKey(0)
    kx, kw_ = jax.random.split(key)

    x = jax.random.normal(kx, (N, C_IN, H, W), dtype=jnp.float32)

    # kaiming_normal_(mode='fan_out', nonlinearity='relu'): std = sqrt(2 / (C_out*KH*KW))
    fan_out = C_OUT * KH * KW
    std = (2.0 / fan_out) ** 0.5
    weight = std * jax.random.normal(kw_, (C_OUT, C_IN, KH, KW), dtype=jnp.float32)

    # constant_init(bn, 1, bias=0)
    gamma = jnp.ones((C_OUT,), dtype=jnp.float32)
    beta = jnp.zeros((C_OUT,), dtype=jnp.float32)

    out = conv_module_forward(x, weight, gamma, beta, stride=STRIDE, padding=PADDING)
    out = jax.block_until_ready(out)

    ref = _reference(x, weight, gamma, beta, STRIDE, PADDING)
    assert out.shape == (N, C_OUT, H, W), out.shape
    max_err = float(jnp.max(jnp.abs(out - ref)))
    assert jnp.allclose(out, ref, atol=1e-3, rtol=1e-3), max_err

    print("KERNEL_OK")
</pallas_src>

<mosaic_0001>
module attributes {stable_mosaic.version = 11 : i64} {
  func.func @_conv_stats_kernel(%arg0: i32, %arg1: i32, %arg2: memref<512x128xbf16, #tpu.memory_space<vmem>>, %arg3: memref<128x128xbf16, #tpu.memory_space<vmem>>, %arg4: memref<512x128xf32, #tpu.memory_space<vmem>>, %arg5: memref<1x1x128xf32, #tpu.memory_space<vmem>>, %arg6: memref<1x1x128xf32, #tpu.memory_space<vmem>>) attributes {dimension_semantics = [#tpu.dimension_semantics<parallel>, #tpu.dimension_semantics<arbitrary>], iteration_bounds = array<i64: 1, 1>, scalar_prefetch = 0 : i64, scratch_operands = 0 : i64, tpu.core_type = #tpu.core_type<tc>, window_params = [{transform_indices = @transform_0, window_bounds = array<i64: 512, 128>}, {transform_indices = @transform_1, window_bounds = array<i64: 128, 128>}, {transform_indices = @transform_2, window_bounds = array<i64: 512, 128>}, {transform_indices = @transform_3, window_bounds = array<i64: 1, 1, 128>}, {transform_indices = @transform_4, window_bounds = array<i64: 1, 1, 128>}]} {
    %c0_i32 = arith.constant 0 : i32
    %0 = arith.cmpi eq, %arg1, %c0_i32 : i32
    %1 = arith.extui %0 : i1 to i32
    %c0_i32_0 = arith.constant 0 : i32
    %2 = arith.cmpi ne, %1, %c0_i32_0 : i32
    scf.if %2 {
      %cst_10 = arith.constant 0.000000e+00 : f32
      %12 = vector.broadcast %cst_10 : f32 to vector<512x128xf32>
      %c0_11 = arith.constant 0 : index
      %c0_12 = arith.constant 0 : index
      %13 = vector.load %arg4[%c0_11, %c0_12] : memref<512x128xf32, #tpu.memory_space<vmem>>, vector<512x128xf32>
      tpu.vector_store %arg4[%c0_11, %c0_12], %12 {strides = array<i32>} : memref<512x128xf32, #tpu.memory_space<vmem>>, vector<512x128xf32>,
    } else {
    }
    %c0 = arith.constant 0 : index
    %c0_1 = arith.constant 0 : index
    %3 = vector.load %arg4[%c0, %c0_1] : memref<512x128xf32, #tpu.memory_space<vmem>>, vector<512x128xf32>
    %c0_2 = arith.constant 0 : index
    %c0_3 = arith.constant 0 : index
    %4 = vector.load %arg2[%c0_2, %c0_3] : memref<512x128xbf16, #tpu.memory_space<vmem>>, vector<512x128xbf16>
    %c0_4 = arith.constant 0 : index
    %c0_5 = arith.constant 0 : index
    %5 = vector.load %arg3[%c0_4, %c0_5] : memref<128x128xbf16, #tpu.memory_space<vmem>>, vector<128x128xbf16>
    %cst = arith.constant dense<0.000000e+00> : vector<512x128xf32>
    %6 = tpu.matmul %4, %5, %cst {dimension_numbers = #tpu.dot_dimension_numbers<[1], [0], [0], [1], [0, 0, 1, 1], [], []>} : vector<512x128xbf16>, vector<128x128xbf16>, vector<512x128xf32> -> vector<512x128xf32>
    %7 = arith.addf %3, %6 : vector<512x128xf32>
    %c0_6 = arith.constant 0 : index
    %c0_7 = arith.constant 0 : index
    %8 = vector.load %arg4[%c0_6, %c0_7] : memref<512x128xf32, #tpu.memory_space<vmem>>, vector<512x128xf32>
    tpu.vector_store %arg4[%c0_6, %c0_7], %7 {strides = array<i32>} : memref<512x128xf32, #tpu.memory_space<vmem>>, vector<512x128xf32>,
    %c0_i32_8 = arith.constant 0 : i32
    %9 = arith.cmpi eq, %arg1, %c0_i32_8 : i32
    %10 = arith.extui %9 : i1 to i32
    %c0_i32_9 = arith.constant 0 : i32
    %11 = arith.cmpi ne, %10, %c0_i32_9 : i32
    scf.if %11 {
      %c0_10 = arith.constant 0 : index
      %c0_11 = arith.constant 0 : index
      %12 = vector.load %arg4[%c0_10, %c0_11] : memref<512x128xf32, #tpu.memory_space<vmem>>, vector<512x128xf32>
      %cst_12 = arith.constant dense<0.000000e+00> : vector<128xf32>
      %13 = vector.multi_reduction <add>, %12, %cst_12 [0] : vector<512x128xf32> to vector<128xf32>
      %14 = vector.shape_cast %13 : vector<128xf32> to vector<1x128xf32>
      %15 = vector.shape_cast %14 : vector<1x128xf32> to vector<1x1x128xf32>
      %c0_13 = arith.constant 0 : index
      %c0_14 = arith.constant 0 : index
      %c0_15 = arith.constant 0 : index
      %16 = vector.load %arg5[%c0_13, %c0_14, %c0_15] : memref<1x1x128xf32, #tpu.memory_space<vmem>>, vector<1x1x128xf32>
      tpu.vector_store %arg5[%c0_13, %c0_14, %c0_15], %15 {strides = array<i32>} : memref<1x1x128xf32, #tpu.memory_space<vmem>>, vector<1x1x128xf32>,
      %17 = arith.mulf %12, %12 : vector<512x128xf32>
      %cst_16 = arith.constant dense<0.000000e+00> : vector<128xf32>
      %18 = vector.multi_reduction <add>, %17, %cst_16 [0] : vector<512x128xf32> to vector<128xf32>
      %19 = vector.shape_cast %18 : vector<128xf32> to vector<1x128xf32>
      %20 = vector.shape_cast %19 : vector<1x128xf32> to vector<1x1x128xf32>
      %c0_17 = arith.constant 0 : index
      %c0_18 = arith.constant 0 : index
      %c0_19 = arith.constant 0 : index
      %21 = vector.load %arg6[%c0_17, %c0_18, %c0_19] : memref<1x1x128xf32, #tpu.memory_space<vmem>>, vector<1x1x128xf32>
      tpu.vector_store %arg6[%c0_17, %c0_18, %c0_19], %20 {strides = array<i32>} : memref<1x1x128xf32, #tpu.memory_space<vmem>>, vector<1x1x128xf32>,
    } else {
    }
    return
  }
  func.func @transform_0(%arg0: i32, %arg1: i32) -> (i32, i32) {
    %c0_i32 = arith.constant 0 : i32
    return %arg0, %arg1 : i32, i32
  }
  func.func @transform_1(%arg0: i32, %arg1: i32) -> (i32, i32) {
    %c0_i32 = arith.constant 0 : i32
    %c0_i32_0 = arith.constant 0 : i32
    return %arg1, %c0_i32 : i32, i32
  }
  func.func @transform_2(%arg0: i32, %arg1: i32) -> (i32, i32) {
    %c0_i32 = arith.constant 0 : i32
    %c0_i32_0 = arith.constant 0 : i32
    return %arg0, %c0_i32 : i32, i32
  }
  func.func @transform_3(%arg0: i32, %arg1: i32) -> (i32, i32, i32) {
    %c0_i32 = arith.constant 0 : i32
    %c0_i32_0 = arith.constant 0 : i32
    %c0_i32_1 = arith.constant 0 : i32
    return %arg0, %c0_i32, %c0_i32_0 : i32, i32, i32
  }
  func.func @transform_4(%arg0: i32, %arg1: i32) -> (i32, i32, i32) {
    %c0_i32 = arith.constant 0 : i32
    %c0_i32_0 = arith.constant 0 : i32
    %c0_i32_1 = arith.constant 0 : i32
    return %arg0, %c0_i32, %c0_i32_0 : i32, i32, i32
  }
}

module attributes {stable_mosaic.version = 11 : i64} {
  func.func @_bn_relu_kernel(%arg0: i32, %arg1: memref<512x128xf32, #tpu.memory_space<vmem>>, %arg2: memref<1x128xf32, #tpu.memory_space<vmem>>, %arg3: memref<1x128xf32, #tpu.memory_space<vmem>>, %arg4: memref<512x128xf32, #tpu.memory_space<vmem>>) attributes {dimension_semantics = [#tpu.dimension_semantics<parallel>], iteration_bounds = array<i64: 1>, scalar_prefetch = 0 : i64, scratch_operands = 0 : i64, tpu.core_type = #tpu.core_type<tc>, window_params = [{transform_indices = @transform_0, window_bounds = array<i64: 512, 128>}, {pipeline_mode = #tpu.pipeline_mode<synchronous>, transform_indices = @transform_1, window_bounds = array<i64: 1, 128>}, {pipeline_mode = #tpu.pipeline_mode<synchronous>, transform_indices = @transform_2, window_bounds = array<i64: 1, 128>}, {transform_indices = @transform_3, window_bounds = array<i64: 512, 128>}]} {
    %c0 = arith.constant 0 : index
    %c0_0 = arith.constant 0 : index
    %0 = vector.load %arg1[%c0, %c0_0] : memref<512x128xf32, #tpu.memory_space<vmem>>, vector<512x128xf32>
    %c0_1 = arith.constant 0 : index
    %c0_2 = arith.constant 0 : index
    %1 = vector.load %arg2[%c0_1, %c0_2] : memref<1x128xf32, #tpu.memory_space<vmem>>, vector<1x128xf32>
    %2 = vector.broadcast %1 : vector<1x128xf32> to vector<512x128xf32>
    %3 = arith.mulf %0, %2 : vector<512x128xf32>
    %c0_3 = arith.constant 0 : index
    %c0_4 = arith.constant 0 : index
    %4 = vector.load %arg3[%c0_3, %c0_4] : memref<1x128xf32, #tpu.memory_space<vmem>>, vector<1x128xf32>
    %5 = vector.broadcast %4 : vector<1x128xf32> to vector<512x128xf32>
    %6 = arith.addf %3, %5 : vector<512x128xf32>
    %cst = arith.constant 0.000000e+00 : f32
    %7 = vector.broadcast %cst : f32 to vector<512x128xf32>
    %8 = arith.maximumf %6, %7 : vector<512x128xf32>
    %c0_5 = arith.constant 0 : index
    %c0_6 = arith.constant 0 : index
    %9 = vector.load %arg4[%c0_5, %c0_6] : memref<512x128xf32, #tpu.memory_space<vmem>>, vector<512x128xf32>
    tpu.vector_store %arg4[%c0_5, %c0_6], %8 {strides = array<i32>} : memref<512x128xf32, #tpu.memory_space<vmem>>, vector<512x128xf32>,
    return
  }
  func.func @transform_0(%arg0: i32) -> (i32, i32) {
    %c0_i32 = arith.constant 0 : i32
    %c0_i32_0 = arith.constant 0 : i32
    return %arg0, %c0_i32 : i32, i32
  }
  func.func @transform_1(%arg0: i32) -> (i32, i32) {
    %c0_i32 = arith.constant 0 : i32
    %c0_i32_0 = arith.constant 0 : i32
    %c0_i32_1 = arith.constant 0 : i32
    return %c0_i32, %c0_i32_0 : i32, i32
  }
  func.func @transform_2(%arg0: i32) -> (i32, i32) {
    %c0_i32 = arith.constant 0 : i32
    %c0_i32_0 = arith.constant 0 : i32
    %c0_i32_1 = arith.constant 0 : i32
    return %c0_i32, %c0_i32_0 : i32, i32
  }
  func.func @transform_3(%arg0: i32) -> (i32, i32) {
    %c0_i32 = arith.constant 0 : i32
    %c0_i32_0 = arith.constant 0 : i32
    return %arg0, %c0_i32 : i32, i32
  }
}

</mosaic_0001>

<bundles_post_ra>
// kernel: conv_module_forward.3
= control target key start
LH: loop header
LB: loop body
LE: loop exit
PB: predicated region body
PF: predicated region fallthrough
CT: control target
= control target key end

     0   :  { %s896_s0 = inlined_call_operand.vmem [shape: f32[512,128], index: 0, kind: input, shape index: {}]   ;;  %s897_s1 = inlined_call_operand.vmem [shape: f32[1,128], index: 1, kind: input, shape index: {}]   ;;  %s898_s2 = inlined_call_operand.vmem [shape: f32[1,128], index: 2, kind: input, shape index: {}]   ;;  %s899_s3 = inlined_call_operand.vmem [shape: f32[512,128], index: 3, kind: output, shape index: {}]  }
   0x1   :  { %v14_v0 = vld [vmem:[%s896_s0] sm:$0xff]  ;;  %v15_v4 = vld [vmem:[%s896_s0 + $0x8] sm:$0xff]  ;;  %v16_v5 = vld [vmem:[%s896_s0 + $0x10] sm:$0xff] }
   0x2   :  { %v380_v1 = vld [vmem:[%s897_s1] ss:$0 sm:$0xff]  ;;  %v17_v6 = vld [vmem:[%s896_s0 + $0x18] sm:$0xff]  ;;  %v19_v11 = vld [vmem:[%s896_s0 + $0x28] sm:$0xff] }
   0x3   :  { %v385_v2 = vld [vmem:[%s898_s2] ss:$0 sm:$0xff]  ;;  %v85_v3 = vmul.f32 %v380_v1, %v14_v0  ;;  %v86_v7 = vmul.f32 %v380_v1, %v15_v4  ;;  %v87_v8 = vmul.f32 %v380_v1, %v16_v5  ;;  %v88_v9 = vmul.f32 %v380_v1, %v17_v6  ;;  %v20_v12 = vld [vmem:[%s896_s0 + $0x30] sm:$0xff]  ;;  %v21_v17 = vld [vmem:[%s896_s0 + $0x38] sm:$0xff] }
   0x4   :  { %v18_v10 = vld [vmem:[%s896_s0 + $0x20] sm:$0xff]  ;;  %v90_v15 = vmul.f32 %v380_v1, %v19_v11  ;;  %v91_v16 = vmul.f32 %v380_v1, %v20_v12  ;;  %v92_v21 = vmul.f32 %v380_v1, %v21_v17  ;;  %v23_v27 = vld [vmem:[%s896_s0 + $0x48] sm:$0xff]  ;;  %v24_v28 = vld [vmem:[%s896_s0 + $0x50] sm:$0xff] }
   0x5   :  { %v156_v13 = vadd.f32 %v385_v2, %v85_v3  ;;  %v89_v14 = vmul.f32 %v380_v1, %v18_v10  ;;  %v157_v18 = vadd.f32 %v385_v2, %v86_v7  ;;  %v158_v19 = vadd.f32 %v385_v2, %v87_v8  ;;  %v22_v22 = vld [vmem:[%s896_s0 + $0x40] sm:$0xff]  ;;  %v25_v29 = vld [vmem:[%s896_s0 + $0x58] sm:$0xff]  ;;  %v27_v35 = vld [vmem:[%s896_s0 + $0x68] sm:$0xff] }
   0x6   :  { %v159_v20 = vadd.f32 %v385_v2, %v88_v9  ;;  %v161_v25 = vadd.f32 %v385_v2, %v90_v15  ;;  %v162_v26 = vadd.f32 %v385_v2, %v91_v16  ;;  %v163_v33 = vadd.f32 %v385_v2, %v92_v21  ;;  %v26_v34 = vld [vmem:[%s896_s0 + $0x60] sm:$0xff]  ;;  %v28_v36 = vld [vmem:[%s896_s0 + $0x70] sm:$0xff]  ;;  %v29_v41 = vld [vmem:[%s896_s0 + $0x78] sm:$0xff] }
   0x7   :  { %v220_v23 = vmax.f32 %v156_v13, 0.0  ;;  %v160_v24 = vadd.f32 %v385_v2, %v89_v14  ;;  %v221_v30 = vmax.f32 %v157_v18, 0.0  ;;  %v222_v31 = vmax.f32 %v158_v19, 0.0  ;;  %v30_v54 = vld [vmem:[%s896_s0 + $0x80] sm:$0xff]  ;;  %v31_v59 = vld [vmem:[%s896_s0 + $0x88] sm:$0xff]  ;;  %v32_v60 = vld [vmem:[%s896_s0 + $0x90] sm:$0xff] }
   0x8   :  { %v223_v32 = vmax.f32 %v159_v20, 0.0  ;;  %v225_v38 = vmax.f32 %v161_v25, 0.0  ;;  %v226_v39 = vmax.f32 %v162_v26, 0.0  ;;  %v93_v40 = vmul.f32 %v380_v1, %v22_v22  ;;  %v33_v61 = vld [vmem:[%s896_s0 + $0x98] sm:$0xff]  ;;  %v34_v4 = vld [vmem:[%s896_s0 + $0xa0] sm:$0xff]  ;;  %v35_v5 = vld [vmem:[%s896_s0 + $0xa8] sm:$0xff] }
   0x9   :  { %284 = vst [vmem:[%s899_s3] sm:$0xff] %v220_v23  ;;  %v224_v37 = vmax.f32 %v160_v24, 0.0  ;;  %285 = vst [vmem:[%s899_s3 + $0x8] sm:$0xff] %v221_v30  ;;  %v227_v42 = vmax.f32 %v163_v33, 0.0  ;;  %v94_v43 = vmul.f32 %v380_v1, %v23_v27  ;;  %v95_v44 = vmul.f32 %v380_v1, %v24_v28  ;;  %v36_v6 = vld [vmem:[%s896_s0 + $0xb0] sm:$0xff]  ;;  %v37_v11 = vld [vmem:[%s896_s0 + $0xb8] sm:$0xff] }
   0xa   :  { %286 = vst [vmem:[%s899_s3 + $0x10] sm:$0xff] %v222_v31  ;;  %287 = vst [vmem:[%s899_s3 + $0x18] sm:$0xff] %v223_v32  ;;  %v96_v45 = vmul.f32 %v380_v1, %v25_v29  ;;  %v164_v46 = vadd.f32 %v385_v2, %v93_v40  ;;  %v97_v47 = vmul.f32 %v380_v1, %v26_v34  ;;  %v38_v24 = vld [vmem:[%s896_s0 + $0xc0] sm:$0xff]  ;;  %v39_v29 = vld [vmem:[%s896_s0 + $0xc8] sm:$0xff] }
   0xb   :  { %288 = vst [vmem:[%s899_s3 + $0x20] sm:$0xff] %v224_v37  ;;  %289 = vst [vmem:[%s899_s3 + $0x28] sm:$0xff] %v225_v38  ;;  %v98_v48 = vmul.f32 %v380_v1, %v27_v35  ;;  %v99_v49 = vmul.f32 %v380_v1, %v28_v36  ;;  %v165_v50 = vadd.f32 %v385_v2, %v94_v43  ;;  %v40_v30 = vld [vmem:[%s896_s0 + $0xd0] sm:$0xff]  ;;  %v41_v31 = vld [vmem:[%s896_s0 + $0xd8] sm:$0xff] }
   0xc   :  { %290 = vst [vmem:[%s899_s3 + $0x30] sm:$0xff] %v226_v39  ;;  %291 = vst [vmem:[%s899_s3 + $0x38] sm:$0xff] %v227_v42  ;;  %v166_v51 = vadd.f32 %v385_v2, %v95_v44  ;;  %v167_v52 = vadd.f32 %v385_v2, %v96_v45  ;;  %v100_v53 = vmul.f32 %v380_v1, %v29_v41  ;;  %v228_v55 = vmax.f32 %v164_v46, 0.0  ;;  %v42_v36 = vld [vmem:[%s896_s0 + $0xe0] sm:$0xff]  ;;  %v43_v37 = vld [vmem:[%s896_s0 + $0xe8] sm:$0xff] }
   0xd   :  { %v168_v56 = vadd.f32 %v385_v2, %v97_v47  ;;  %v169_v57 = vadd.f32 %v385_v2, %v98_v48  ;;  %v170_v58 = vadd.f32 %v385_v2, %v99_v49  ;;  %v229_v62 = vmax.f32 %v165_v50, 0.0  ;;  %v44_v38 = vld [vmem:[%s896_s0 + $0xf0] sm:$0xff]  ;;  %v45_v43 = vld [vmem:[%s896_s0 + $0xf8] sm:$0xff] }
   0xe   :  { %v230_v63 = vmax.f32 %v166_v51, 0.0  ;;  %v231_v0 = vmax.f32 %v167_v52, 0.0  ;;  %v171_v3 = vadd.f32 %v385_v2, %v100_v53  ;;  %292 = vst [vmem:[%s899_s3 + $0x40] sm:$0xff] %v228_v55  ;;  %v101_v10 = vmul.f32 %v380_v1, %v30_v54 }
   0xf   :  { %v232_v7 = vmax.f32 %v168_v56, 0.0  ;;  %v233_v8 = vmax.f32 %v169_v57, 0.0  ;;  %v234_v9 = vmax.f32 %v170_v58, 0.0  ;;  %293 = vst [vmem:[%s899_s3 + $0x48] sm:$0xff] %v229_v62  ;;  %v102_v13 = vmul.f32 %v380_v1, %v31_v59  ;;  %v46_v56 = vld [vmem:[%s896_s0 + $0x100] sm:$0xff]  ;;  %v48_v62 = vld [vmem:[%s896_s0 + $0x110] sm:$0xff] }
  0x10   :  { %294 = vst [vmem:[%s899_s3 + $0x50] sm:$0xff] %v230_v63  ;;  %295 = vst [vmem:[%s899_s3 + $0x58] sm:$0xff] %v231_v0  ;;  %v235_v12 = vmax.f32 %v171_v3, 0.0  ;;  %v103_v14 = vmul.f32 %v380_v1, %v32_v60  ;;  %v104_v15 = vmul.f32 %v380_v1, %v33_v61  ;;  %v172_v16 = vadd.f32 %v385_v2, %v101_v10  ;;  %v47_v61 = vld [vmem:[%s896_s0 + $0x108] sm:$0xff]  ;;  %v49_v63 = vld [vmem:[%s896_s0 + $0x118] sm:$0xff] }
  0x11   :  { %296 = vst [vmem:[%s899_s3 + $0x60] sm:$0xff] %v232_v7  ;;  %297 = vst [vmem:[%s899_s3 + $0x68] sm:$0xff] %v233_v8  ;;  %v105_v17 = vmul.f32 %v380_v1, %v34_v4  ;;  %v106_v18 = vmul.f32 %v380_v1, %v35_v5  ;;  %v107_v19 = vmul.f32 %v380_v1, %v36_v6  ;;  %v50_v6 = vld [vmem:[%s896_s0 + $0x120] sm:$0xff]  ;;  %v51_v7 = vld [vmem:[%s896_s0 + $0x128] sm:$0xff] }
  0x12   :  { %298 = vst [vmem:[%s899_s3 + $0x70] sm:$0xff] %v234_v9  ;;  %299 = vst [vmem:[%s899_s3 + $0x78] sm:$0xff] %v235_v12  ;;  %v173_v20 = vadd.f32 %v385_v2, %v102_v13  ;;  %v174_v21 = vadd.f32 %v385_v2, %v103_v14  ;;  %v175_v22 = vadd.f32 %v385_v2, %v104_v15  ;;  %v236_v25 = vmax.f32 %v172_v16, 0.0  ;;  %v52_v8 = vld [vmem:[%s896_s0 + $0x130] sm:$0xff]  ;;  %v53_v13 = vld [vmem:[%s896_s0 + $0x138] sm:$0xff] }
  0x13   :  { %v108_v23 = vmul.f32 %v380_v1, %v37_v11  ;;  %v176_v26 = vadd.f32 %v385_v2, %v105_v17  ;;  %v177_v27 = vadd.f32 %v385_v2, %v106_v18  ;;  %v178_v28 = vadd.f32 %v385_v2, %v107_v19 }
  0x14   :  { %v237_v32 = vmax.f32 %v173_v20, 0.0  ;;  %v238_v33 = vmax.f32 %v174_v21, 0.0  ;;  %v239_v34 = vmax.f32 %v175_v22, 0.0  ;;  %300 = vst [vmem:[%s899_s3 + $0x80] sm:$0xff] %v236_v25  ;;  %v109_v42 = vmul.f32 %v380_v1, %v38_v24 }
  0x15   :  { %v179_v35 = vadd.f32 %v385_v2, %v108_v23  ;;  %v240_v39 = vmax.f32 %v176_v26, 0.0  ;;  %v241_v40 = vmax.f32 %v177_v27, 0.0  ;;  %v242_v41 = vmax.f32 %v178_v28, 0.0  ;;  %v54_v26 = vld [vmem:[%s896_s0 + $0x140] sm:$0xff] }
  0x16   :  { %301 = vst [vmem:[%s899_s3 + $0x88] sm:$0xff] %v237_v32  ;;  %302 = vst [vmem:[%s899_s3 + $0x90] sm:$0xff] %v238_v33  ;;  %v110_v45 = vmul.f32 %v380_v1, %v39_v29  ;;  %v111_v46 = vmul.f32 %v380_v1, %v40_v30  ;;  %v112_v47 = vmul.f32 %v380_v1, %v41_v31  ;;  %v55_v31 = vld [vmem:[%s896_s0 + $0x148] sm:$0xff]  ;;  %v56_v32 = vld [vmem:[%s896_s0 + $0x150] sm:$0xff] }
  0x17   :  { %303 = vst [vmem:[%s899_s3 + $0x98] sm:$0xff] %v239_v34  ;;  %v243_v44 = vmax.f32 %v179_v35, 0.0  ;;  %304 = vst [vmem:[%s899_s3 + $0xa0] sm:$0xff] %v240_v39  ;;  %v180_v48 = vadd.f32 %v385_v2, %v109_v42  ;;  %v113_v49 = vmul.f32 %v380_v1, %v42_v36  ;;  %v114_v50 = vmul.f32 %v380_v1, %v43_v37  ;;  %v57_v33 = vld [vmem:[%s896_s0 + $0x158] sm:$0xff]  ;;  %v59_v39 = vld [vmem:[%s896_s0 + $0x168] sm:$0xff] }
  0x18   :  { %305 = vst [vmem:[%s899_s3 + $0xa8] sm:$0xff] %v241_v40  ;;  %306 = vst [vmem:[%s899_s3 + $0xb0] sm:$0xff] %v242_v41  ;;  %v115_v51 = vmul.f32 %v380_v1, %v44_v38  ;;  %v181_v52 = vadd.f32 %v385_v2, %v110_v45  ;;  %v182_v53 = vadd.f32 %v385_v2, %v111_v46  ;;  %v58_v38 = vld [vmem:[%s896_s0 + $0x160] sm:$0xff]  ;;  %v60_v40 = vld [vmem:[%s896_s0 + $0x170] sm:$0xff] }
  0x19   :  { %307 = vst [vmem:[%s899_s3 + $0xb8] sm:$0xff] %v243_v44  ;;  %v183_v54 = vadd.f32 %v385_v2, %v112_v47  ;;  %v116_v55 = vmul.f32 %v380_v1, %v45_v43  ;;  %v244_v57 = vmax.f32 %v180_v48, 0.0  ;;  %v184_v58 = vadd.f32 %v385_v2, %v113_v49  ;;  %v61_v45 = vld [vmem:[%s896_s0 + $0x178] sm:$0xff] }
  0x1a   :  { %v185_v59 = vadd.f32 %v385_v2, %v114_v50  ;;  %v186_v60 = vadd.f32 %v385_v2, %v115_v51  ;;  %v245_v0 = vmax.f32 %v181_v52, 0.0  ;;  %v246_v3 = vmax.f32 %v182_v53, 0.0 }
  0x1b   :  { %v247_v4 = vmax.f32 %v183_v54, 0.0  ;;  %v187_v5 = vadd.f32 %v385_v2, %v116_v55  ;;  %308 = vst [vmem:[%s899_s3 + $0xc0] sm:$0xff] %v244_v57  ;;  %v248_v9 = vmax.f32 %v184_v58, 0.0  ;;  %v117_v12 = vmul.f32 %v380_v1, %v46_v56  ;;  %v62_v58 = vld [vmem:[%s896_s0 + $0x180] sm:$0xff] }
  0x1c   :  { %v249_v10 = vmax.f32 %v185_v59, 0.0  ;;  %v250_v11 = vmax.f32 %v186_v60, 0.0  ;;  %309 = vst [vmem:[%s899_s3 + $0xc8] sm:$0xff] %v245_v0  ;;  %310 = vst [vmem:[%s899_s3 + $0xd0] sm:$0xff] %v246_v3  ;;  %v118_v15 = vmul.f32 %v380_v1, %v47_v61  ;;  %v119_v16 = vmul.f32 %v380_v1, %v48_v62  ;;  %v64_v0 = vld [vmem:[%s896_s0 + $0x190] sm:$0xff]  ;;  %v65_v3 = vld [vmem:[%s896_s0 + $0x198] sm:$0xff] }
  0x1d   :  { %311 = vst [vmem:[%s899_s3 + $0xd8] sm:$0xff] %v247_v4  ;;  %v251_v14 = vmax.f32 %v187_v5, 0.0  ;;  %v120_v17 = vmul.f32 %v380_v1, %v49_v63  ;;  %312 = vst [vmem:[%s899_s3 + $0xe0] sm:$0xff] %v248_v9  ;;  %v188_v18 = vadd.f32 %v385_v2, %v117_v12  ;;  %v121_v19 = vmul.f32 %v380_v1, %v50_v6  ;;  %v63_v63 = vld [vmem:[%s896_s0 + $0x188] sm:$0xff] }
  0x1e   :  { %313 = vst [vmem:[%s899_s3 + $0xe8] sm:$0xff] %v249_v10  ;;  %314 = vst [vmem:[%s899_s3 + $0xf0] sm:$0xff] %v250_v11  ;;  %v122_v20 = vmul.f32 %v380_v1, %v51_v7  ;;  %v123_v21 = vmul.f32 %v380_v1, %v52_v8  ;;  %v189_v22 = vadd.f32 %v385_v2, %v118_v15  ;;  %v66_v8 = vld [vmem:[%s896_s0 + $0x1a0] sm:$0xff]  ;;  %v67_v9 = vld [vmem:[%s896_s0 + $0x1a8] sm:$0xff] }
  0x1f   :  { %315 = vst [vmem:[%s899_s3 + $0xf8] sm:$0xff] %v251_v14  ;;  %v190_v23 = vadd.f32 %v385_v2, %v119_v16  ;;  %v191_v24 = vadd.f32 %v385_v2, %v120_v17  ;;  %v124_v25 = vmul.f32 %v380_v1, %v53_v13  ;;  %v252_v27 = vmax.f32 %v188_v18, 0.0  ;;  %v68_v10 = vld [vmem:[%s896_s0 + $0x1b0] sm:$0xff]  ;;  %v69_v15 = vld [vmem:[%s896_s0 + $0x1b8] sm:$0xff] }
  0x20   :  { %v192_v28 = vadd.f32 %v385_v2, %v121_v19  ;;  %v193_v29 = vadd.f32 %v385_v2, %v122_v20  ;;  %v194_v30 = vadd.f32 %v385_v2, %v123_v21  ;;  %v253_v34 = vmax.f32 %v189_v22, 0.0 }
  0x21   :  { %v254_v35 = vmax.f32 %v190_v23, 0.0  ;;  %v255_v36 = vmax.f32 %v191_v24, 0.0  ;;  %v195_v37 = vadd.f32 %v385_v2, %v124_v25  ;;  %316 = vst [vmem:[%s899_s3 + $0x100] sm:$0xff] %v252_v27  ;;  %v125_v44 = vmul.f32 %v380_v1, %v54_v26 }
  0x22   :  { %v256_v41 = vmax.f32 %v192_v28, 0.0  ;;  %v257_v42 = vmax.f32 %v193_v29, 0.0  ;;  %v258_v43 = vmax.f32 %v194_v30, 0.0  ;;  %317 = vst [vmem:[%s899_s3 + $0x108] sm:$0xff] %v253_v34  ;;  %v126_v47 = vmul.f32 %v380_v1, %v55_v31  ;;  %v70_v28 = vld [vmem:[%s896_s0 + $0x1c0] sm:$0xff]  ;;  %v72_v34 = vld [vmem:[%s896_s0 + $0x1d0] sm:$0xff] }
  0x23   :  { %318 = vst [vmem:[%s899_s3 + $0x110] sm:$0xff] %v254_v35  ;;  %319 = vst [vmem:[%s899_s3 + $0x118] sm:$0xff] %v255_v36  ;;  %v259_v46 = vmax.f32 %v195_v37, 0.0  ;;  %v127_v48 = vmul.f32 %v380_v1, %v56_v32  ;;  %v128_v49 = vmul.f32 %v380_v1, %v57_v33  ;;  %v196_v50 = vadd.f32 %v385_v2, %v125_v44  ;;  %v71_v33 = vld [vmem:[%s896_s0 + $0x1c8] sm:$0xff]  ;;  %v73_v35 = vld [vmem:[%s896_s0 + $0x1d8] sm:$0xff] }
  0x24   :  { %320 = vst [vmem:[%s899_s3 + $0x120] sm:$0xff] %v256_v41  ;;  %321 = vst [vmem:[%s899_s3 + $0x128] sm:$0xff] %v257_v42  ;;  %v129_v51 = vmul.f32 %v380_v1, %v58_v38  ;;  %v130_v52 = vmul.f32 %v380_v1, %v59_v39  ;;  %v131_v53 = vmul.f32 %v380_v1, %v60_v40  ;;  %v74_v40 = vld [vmem:[%s896_s0 + $0x1e0] sm:$0xff]  ;;  %v75_v41 = vld [vmem:[%s896_s0 + $0x1e8] sm:$0xff] }
  0x25   :  { %322 = vst [vmem:[%s899_s3 + $0x130] sm:$0xff] %v258_v43  ;;  %323 = vst [vmem:[%s899_s3 + $0x138] sm:$0xff] %v259_v46  ;;  %v197_v54 = vadd.f32 %v385_v2, %v126_v47  ;;  %v198_v55 = vadd.f32 %v385_v2, %v127_v48  ;;  %v199_v56 = vadd.f32 %v385_v2, %v128_v49  ;;  %v260_v59 = vmax.f32 %v196_v50, 0.0  ;;  %v76_v42 = vld [vmem:[%s896_s0 + $0x1f0] sm:$0xff]  ;;  %v77_v47 = vld [vmem:[%s896_s0 + $0x1f8] sm:$0xff] }
  0x26   :  { %v132_v57 = vmul.f32 %v380_v1, %v61_v45  ;;  %v200_v60 = vadd.f32 %v385_v2, %v129_v51  ;;  %v201_v61 = vadd.f32 %v385_v2, %v130_v52  ;;  %v202_v62 = vadd.f32 %v385_v2, %v131_v53 }
  0x27   :  { %v261_v4 = vmax.f32 %v197_v54, 0.0  ;;  %v262_v5 = vmax.f32 %v198_v55, 0.0  ;;  %v263_v6 = vmax.f32 %v199_v56, 0.0  ;;  %324 = vst [vmem:[%s899_s3 + $0x140] sm:$0xff] %v260_v59  ;;  %v133_v14 = vmul.f32 %v380_v1, %v62_v58 }
  0x28   :  { %v203_v7 = vadd.f32 %v385_v2, %v132_v57  ;;  %v264_v11 = vmax.f32 %v200_v60, 0.0  ;;  %v265_v12 = vmax.f32 %v201_v61, 0.0  ;;  %v266_v13 = vmax.f32 %v202_v62, 0.0 }
  0x29   :  { %325 = vst [vmem:[%s899_s3 + $0x148] sm:$0xff] %v261_v4  ;;  %326 = vst [vmem:[%s899_s3 + $0x150] sm:$0xff] %v262_v5  ;;  %v134_v17 = vmul.f32 %v380_v1, %v63_v63  ;;  %v135_v18 = vmul.f32 %v380_v1, %v64_v0  ;;  %v136_v19 = vmul.f32 %v380_v1, %v65_v3 }
  0x2a   :  { %327 = vst [vmem:[%s899_s3 + $0x158] sm:$0xff] %v263_v6  ;;  %v267_v16 = vmax.f32 %v203_v7, 0.0  ;;  %328 = vst [vmem:[%s899_s3 + $0x160] sm:$0xff] %v264_v11  ;;  %v204_v20 = vadd.f32 %v385_v2, %v133_v14  ;;  %v137_v21 = vmul.f32 %v380_v1, %v66_v8  ;;  %v138_v22 = vmul.f32 %v380_v1, %v67_v9 }
  0x2b   :  { %329 = vst [vmem:[%s899_s3 + $0x168] sm:$0xff] %v265_v12  ;;  %330 = vst [vmem:[%s899_s3 + $0x170] sm:$0xff] %v266_v13  ;;  %v139_v23 = vmul.f32 %v380_v1, %v68_v10  ;;  %v205_v24 = vadd.f32 %v385_v2, %v134_v17  ;;  %v206_v25 = vadd.f32 %v385_v2, %v135_v18 }
  0x2c   :  { %331 = vst [vmem:[%s899_s3 + $0x178] sm:$0xff] %v267_v16  ;;  %v207_v26 = vadd.f32 %v385_v2, %v136_v19  ;;  %v140_v27 = vmul.f32 %v380_v1, %v69_v15  ;;  %v268_v29 = vmax.f32 %v204_v20, 0.0  ;;  %v208_v30 = vadd.f32 %v385_v2, %v137_v21 }
  0x2d   :  { %v209_v31 = vadd.f32 %v385_v2, %v138_v22  ;;  %v210_v32 = vadd.f32 %v385_v2, %v139_v23  ;;  %v269_v36 = vmax.f32 %v205_v24, 0.0  ;;  %v270_v37 = vmax.f32 %v206_v25, 0.0 }
  0x2e   :  { %v271_v38 = vmax.f32 %v207_v26, 0.0  ;;  %v211_v39 = vadd.f32 %v385_v2, %v140_v27  ;;  %332 = vst [vmem:[%s899_s3 + $0x180] sm:$0xff] %v268_v29  ;;  %v272_v43 = vmax.f32 %v208_v30, 0.0  ;;  %v141_v46 = vmul.f32 %v380_v1, %v70_v28 }
  0x2f   :  { %v273_v44 = vmax.f32 %v209_v31, 0.0  ;;  %v274_v45 = vmax.f32 %v210_v32, 0.0  ;;  %333 = vst [vmem:[%s899_s3 + $0x188] sm:$0xff] %v269_v36  ;;  %334 = vst [vmem:[%s899_s3 + $0x190] sm:$0xff] %v270_v37  ;;  %v142_v49 = vmul.f32 %v380_v1, %v71_v33  ;;  %v143_v50 = vmul.f32 %v380_v1, %v72_v34 }
  0x30   :  { %335 = vst [vmem:[%s899_s3 + $0x198] sm:$0xff] %v271_v38  ;;  %v275_v48 = vmax.f32 %v211_v39, 0.0  ;;  %v144_v51 = vmul.f32 %v380_v1, %v73_v35  ;;  %336 = vst [vmem:[%s899_s3 + $0x1a0] sm:$0xff] %v272_v43  ;;  %v212_v52 = vadd.f32 %v385_v2, %v141_v46  ;;  %v145_v53 = vmul.f32 %v380_v1, %v74_v40 }
  0x31   :  { %337 = vst [vmem:[%s899_s3 + $0x1a8] sm:$0xff] %v273_v44  ;;  %338 = vst [vmem:[%s899_s3 + $0x1b0] sm:$0xff] %v274_v45  ;;  %v146_v54 = vmul.f32 %v380_v1, %v75_v41  ;;  %v147_v55 = vmul.f32 %v380_v1, %v76_v42  ;;  %v213_v56 = vadd.f32 %v385_v2, %v142_v49 }
  0x32   :  { %339 = vst [vmem:[%s899_s3 + $0x1b8] sm:$0xff] %v275_v48  ;;  %v214_v57 = vadd.f32 %v385_v2, %v143_v50  ;;  %v215_v58 = vadd.f32 %v385_v2, %v144_v51  ;;  %v148_v59 = vmul.f32 %v380_v1, %v77_v47  ;;  %v276_v60 = vmax.f32 %v212_v52, 0.0 }
  0x33   :  { %v216_v61 = vadd.f32 %v385_v2, %v145_v53  ;;  %v217_v62 = vadd.f32 %v385_v2, %v146_v54  ;;  %v218_v63 = vadd.f32 %v385_v2, %v147_v55  ;;  %v277_v0 = vmax.f32 %v213_v56, 0.0 }
  0x34   :  { %v278_v3 = vmax.f32 %v214_v57, 0.0  ;;  %v279_v4 = vmax.f32 %v215_v58, 0.0  ;;  %v219_v5 = vadd.f32 %v385_v2, %v148_v59  ;;  %340 = vst [vmem:[%s899_s3 + $0x1c0] sm:$0xff] %v276_v60 }
  0x35   :  { %v280_v6 = vmax.f32 %v216_v61, 0.0  ;;  %v281_v7 = vmax.f32 %v217_v62, 0.0  ;;  %v282_v8 = vmax.f32 %v218_v63, 0.0  ;;  %341 = vst [vmem:[%s899_s3 + $0x1c8] sm:$0xff] %v277_v0 }
  0x36   :  { %342 = vst [vmem:[%s899_s3 + $0x1d0] sm:$0xff] %v278_v3  ;;  %343 = vst [vmem:[%s899_s3 + $0x1d8] sm:$0xff] %v279_v4  ;;  %v283_v1 = vmax.f32 %v219_v5, 0.0 }
  0x37   :  { %344 = vst [vmem:[%s899_s3 + $0x1e0] sm:$0xff] %v280_v6  ;;  %345 = vst [vmem:[%s899_s3 + $0x1e8] sm:$0xff] %v281_v7 }
  0x38   :  { %346 = vst [vmem:[%s899_s3 + $0x1f0] sm:$0xff] %v282_v8  ;;  %347 = vst [vmem:[%s899_s3 + $0x1f8] sm:$0xff] %v283_v1 }

// kernel: conv_module_forward.2
= control target key start
LH: loop header
LB: loop body
LE: loop exit
PB: predicated region body
PF: predicated region fallthrough
CT: control target
= control target key end

     0   :  { %s1919_s1 = inlined_call_operand.vmem [shape: bf16[128,128], index: 1, kind: input, shape index: {}]   ;;  %s1920_s0 = inlined_call_operand.vmem [shape: bf16[512,128], index: 0, kind: input, shape index: {}]   ;;  %s1921_s2 = inlined_call_operand.vmem [shape: f32[512,128], index: 2, kind: output, shape index: {0}]   ;;  %s1922_s3 = inlined_call_operand.vmem [shape: f32[1,1,128], index: 3, kind: output, shape index: {1}]   ;;  %s1923_s4 = inlined_call_operand.vmem [shape: f32[1,1,128], index: 4, kind: output, shape index: {2}]  }
   0x1   :  { %v1344_v0 = vld [vmem:[%s1919_s1] sm:$0xff]   ;;  %v1345_v1 = vld [vmem:[%s1919_s1 + $0x8] sm:$0xff]   ;;  %v1346_v2 = vld [vmem:[%s1919_s1 + $0x10] sm:$0xff]  }
   0x2   :  { %1247 = vmatprep.subr.bf16.mxu0 %v1344_v0  ;;  %1327 = vmatprep.subr.bf16.mxu1 %v1344_v0  ;;  %v1347_v3 = vld [vmem:[%s1919_s1 + $0x18] sm:$0xff]   ;;  %v1352_v4 = vld [vmem:[%s1920_s0] sm:$0xff]   ;;  %v1349_v6 = vld [vmem:[%s1919_s1 + $0x28] sm:$0xff]  }
   0x3   :  { %1248 = vmatpush3.bf16.msra.mxu0 %v1344_v0  ;;  %1335 = vmatpush3.bf16.msra.mxu1 %v1344_v0  ;;  %v1348_v5 = vld [vmem:[%s1919_s1 + $0x20] sm:$0xff]   ;;  %v1350_v7 = vld [vmem:[%s1919_s1 + $0x30] sm:$0xff]   ;;  %v1351_v8 = vld [vmem:[%s1919_s1 + $0x38] sm:$0xff]  }
   0x4   :  { %1249 = vmatprep.subr.bf16.mxu0 %v1345_v1  ;;  %1328 = vmatprep.subr.bf16.mxu1 %v1345_v1  ;;  %v1368_v9 = vld [vmem:[%s1920_s0 + $0x80] sm:$0xff]   ;;  %v1353_v10 = vld [vmem:[%s1920_s0 + $0x8] sm:$0xff]   ;;  %v1354_v11 = vld [vmem:[%s1920_s0 + $0x10] sm:$0xff]  }
   0x5   :  { %1263 = vmatprep.mubr.bf16.mxu0 %v1352_v4  ;;  %1295 = vmatprep.mubr.bf16.mxu1 %v1368_v9  ;;  %v1369_v12 = vld [vmem:[%s1920_s0 + $0x88] sm:$0xff]   ;;  %v1370_v13 = vld [vmem:[%s1920_s0 + $0x90] sm:$0xff]   ;;  %v1355_v14 = vld [vmem:[%s1920_s0 + $0x18] sm:$0xff]  }
   0x6   :  { %v1356_v15 = vld [vmem:[%s1920_s0 + $0x20] sm:$0xff]   ;;  %v1371_v16 = vld [vmem:[%s1920_s0 + $0x98] sm:$0xff]   ;;  %v1357_v18 = vld [vmem:[%s1920_s0 + $0x28] sm:$0xff]  }
   0x7   :  { %1250 = vmatpush3.bf16.msra.mxu0 %v1345_v1  ;;  %1336 = vmatpush3.bf16.msra.mxu1 %v1345_v1  ;;  %v1372_v17 = vld [vmem:[%s1920_s0 + $0xa0] sm:$0xff]   ;;  %v1373_v19 = vld [vmem:[%s1920_s0 + $0xa8] sm:$0xff]   ;;  %v1358_v20 = vld [vmem:[%s1920_s0 + $0x30] sm:$0xff]  }
   0x8   :  { %1251 = vmatprep.subr.bf16.mxu0 %v1346_v2  ;;  %1329 = vmatprep.subr.bf16.mxu1 %v1346_v2  ;;  %v1374_v21 = vld [vmem:[%s1920_s0 + $0xb0] sm:$0xff]   ;;  %v1359_v22 = vld [vmem:[%s1920_s0 + $0x38] sm:$0xff]   ;;  %v1360_v24 = vld [vmem:[%s1920_s0 + $0x40] sm:$0xff]  }
   0x9   :  { %v1375_v23 = vld [vmem:[%s1920_s0 + $0xb8] sm:$0xff]   ;;  %v1376_v25 = vld [vmem:[%s1920_s0 + $0xc0] sm:$0xff]   ;;  %v1361_v26 = vld [vmem:[%s1920_s0 + $0x48] sm:$0xff]  }
   0xa   :  { %v1377_v27 = vld [vmem:[%s1920_s0 + $0xc8] sm:$0xff]   ;;  %v1362_v28 = vld [vmem:[%s1920_s0 + $0x50] sm:$0xff]   ;;  %v1363_v30 = vld [vmem:[%s1920_s0 + $0x58] sm:$0xff]  }
   0xb   :  { %1252 = vmatpush3.bf16.msra.mxu0 %v1346_v2  ;;  %1337 = vmatpush3.bf16.msra.mxu1 %v1346_v2  ;;  %v1378_v29 = vld [vmem:[%s1920_s0 + $0xd0] sm:$0xff]   ;;  %v1379_v31 = vld [vmem:[%s1920_s0 + $0xd8] sm:$0xff]   ;;  %v1364_v32 = vld [vmem:[%s1920_s0 + $0x60] sm:$0xff]  }
   0xc   :  { %1253 = vmatprep.subr.bf16.mxu0 %v1347_v3  ;;  %1330 = vmatprep.subr.bf16.mxu1 %v1347_v3  ;;  %v1380_v33 = vld [vmem:[%s1920_s0 + $0xe0] sm:$0xff]   ;;  %v1365_v34 = vld [vmem:[%s1920_s0 + $0x68] sm:$0xff]   ;;  %v1366_v36 = vld [vmem:[%s1920_s0 + $0x70] sm:$0xff]  }
   0xd   :  { %v1381_v35 = vld [vmem:[%s1920_s0 + $0xe8] sm:$0xff]   ;;  %v1382_v37 = vld [vmem:[%s1920_s0 + $0xf0] sm:$0xff]   ;;  %v1367_v38 = vld [vmem:[%s1920_s0 + $0x78] sm:$0xff]  }
   0xe   :  { %v1383_v39 = vld [vmem:[%s1920_s0 + $0xf8] sm:$0xff]  }
   0xf   :  { %1254 = vmatpush3.bf16.msra.mxu0 %v1347_v3  ;;  %1338 = vmatpush3.bf16.msra.mxu1 %v1347_v3 }
  0x10   :  { %1255 = vmatprep.subr.bf16.mxu0 %v1348_v5  ;;  %1331 = vmatprep.subr.bf16.mxu1 %v1348_v5 }
  0x13   :  { %1256 = vmatpush3.bf16.msra.mxu0 %v1348_v5  ;;  %1339 = vmatpush3.bf16.msra.mxu1 %v1348_v5 }
  0x14   :  { %1257 = vmatprep.subr.bf16.mxu0 %v1349_v6  ;;  %1332 = vmatprep.subr.bf16.mxu1 %v1349_v6 }
  0x17   :  { %1258 = vmatpush3.bf16.msra.mxu0 %v1349_v6  ;;  %1340 = vmatpush3.bf16.msra.mxu1 %v1349_v6 }
  0x18   :  { %1259 = vmatprep.subr.bf16.mxu0 %v1350_v7  ;;  %1333 = vmatprep.subr.bf16.mxu1 %v1350_v7 }
  0x1b   :  { %1260 = vmatpush3.bf16.msra.mxu0 %v1350_v7  ;;  %1341 = vmatpush3.bf16.msra.mxu1 %v1350_v7 }
  0x1c   :  { %1261 = vmatprep.subr.bf16.mxu0 %v1351_v8  ;;  %1334 = vmatprep.subr.bf16.mxu1 %v1351_v8 }
  0x1f   :  { %1262 = vmatpush3.bf16.msra.mxu0 %v1351_v8  ;;  %1342 = vmatpush3.bf16.msra.mxu1 %v1351_v8 }
  0x22   :  { %1264 = vmatmul.mubr.bf16.vlgmr.msra.gmra.mrb[0].mxu0 %v1353_v10  ;;  %1296 = vmatmul.mubr.bf16.vlgmr.msra.gmra.mrb[0].mxu1 %v1369_v12 }
  0x23   :  { %1267 = vmatprep.mubr.bf16.mxu0 %v1354_v11  ;;  %1299 = vmatprep.mubr.bf16.mxu1 %v1370_v13 }
  0x2a   :  { %1268 = vmatmul.mubr.bf16.gmra.mrb[4].mxu0 %v1355_v14  ;;  %1300 = vmatmul.mubr.bf16.gmra.mrb[4].mxu1 %v1371_v16 }
  0x2b   :  { %1271 = vmatprep.mubr.bf16.mxu0 %v1356_v15  ;;  %1303 = vmatprep.mubr.bf16.mxu1 %v1372_v17 }
  0x32   :  { %1272 = vmatmul.mubr.bf16.gmra.mrb[8].mxu0 %v1357_v18  ;;  %1304 = vmatmul.mubr.bf16.gmra.mrb[8].mxu1 %v1373_v19 }
  0x33   :  { %1275 = vmatprep.mubr.bf16.mxu0 %v1358_v20  ;;  %1307 = vmatprep.mubr.bf16.mxu1 %v1374_v21 }
  0x3a   :  { %1276 = vmatmul.mubr.bf16.gmra.mrb[12].mxu0 %v1359_v22  ;;  %1308 = vmatmul.mubr.bf16.gmra.mrb[12].mxu1 %v1375_v23 }
  0x3b   :  { %1279 = vmatprep.mubr.bf16.mxu0 %v1360_v24  ;;  %1311 = vmatprep.mubr.bf16.mxu1 %v1376_v25 }
  0x42   :  { %1280 = vmatmul.mubr.bf16.gmra.mrb[16].mxu0 %v1361_v26  ;;  %1312 = vmatmul.mubr.bf16.gmra.mrb[16].mxu1 %v1377_v27 }
  0x43   :  { %1283 = vmatprep.mubr.bf16.mxu0 %v1362_v28  ;;  %1315 = vmatprep.mubr.bf16.mxu1 %v1378_v29 }
  0x4a   :  { %1284 = vmatmul.mubr.bf16.gmra.mrb[20].mxu0 %v1363_v30  ;;  %1316 = vmatmul.mubr.bf16.gmra.mrb[20].mxu1 %v1379_v31 }
  0x4b   :  { %1287 = vmatprep.mubr.bf16.mxu0 %v1364_v32  ;;  %1319 = vmatprep.mubr.bf16.mxu1 %v1380_v33 }
  0x52   :  { %1288 = vmatmul.mubr.bf16.gmra.mrb[24].mxu0 %v1365_v34  ;;  %1320 = vmatmul.mubr.bf16.gmra.mrb[24].mxu1 %v1381_v35 }
  0x53   :  { %1291 = vmatprep.mubr.bf16.mxu0 %v1366_v36  ;;  %1323 = vmatprep.mubr.bf16.mxu1 %v1382_v37 }
  0x5a   :  { %1292 = vmatmul.mubr.bf16.gmra.mrb[28].mxu0 %v1367_v38  ;;  %1324 = vmatmul.mubr.bf16.gmra.mrb[28].mxu1 %v1383_v39 }
  0xf5   :  { %v1265_v40 = vpop.f32.mrb[0].mxu0  ;;  %v1529_v41 = vpop.f32.mrb[0].mxu1 }
  0xf6   :  { %v501_v42 = vpop.f32.mrb[1].mxu0  ;;  %v1531_v43 = vpop.f32.mrb[1].mxu1  ;;  %822 = vst [vmem:[%s1921_s2 + $0x10] sm:$0xff] %v1265_v40  ;;  %854 = vst [vmem:[%s1921_s2 + $0x110] sm:$0xff] %v1529_v41  ;;  %v1023_v51 = vmul.f32 %v1265_v40, %v1265_v40 }
  0xf7   :  { %v1266_v44 = vpop.f32.mrb[2].mxu0  ;;  %v1533_v45 = vpop.f32.mrb[2].mxu1  ;;  %820 = vst [vmem:[%s1921_s2] sm:$0xff] %v501_v42  ;;  %852 = vst [vmem:[%s1921_s2 + $0x100] sm:$0xff] %v1531_v43  ;;  %v1021_v48 = vmul.f32 %v501_v42, %v501_v42 }
  0xf8   :  { %v504_v46 = vpop.f32.mrb[3].mxu0  ;;  %v1542_v47 = vpop.f32.mrb[3].mxu1  ;;  %823 = vst [vmem:[%s1921_s2 + $0x18] sm:$0xff] %v1266_v44  ;;  %855 = vst [vmem:[%s1921_s2 + $0x118] sm:$0xff] %v1533_v45  ;;  %v1024_v56 = vmul.f32 %v1266_v44, %v1266_v44 }
  0xf9   :  { %821 = vst [vmem:[%s1921_s2 + $0x8] sm:$0xff] %v504_v46  ;;  %v951_v49 = vadd.f32 %v504_v46, %v501_v42  ;;  %v1022_v50 = vmul.f32 %v504_v46, %v504_v46  ;;  %853 = vst [vmem:[%s1921_s2 + $0x108] sm:$0xff] %v1542_v47 }
  0xfb   :  { %v952_v52 = vadd.f32 %v1265_v40, %v951_v49  ;;  %v1085_v53 = vadd.f32 %v1022_v50, %v1021_v48 }
  0xfd   :  { %v1269_v54 = vpop.f32.mrb[4].mxu0  ;;  %v1565_v55 = vpop.f32.mrb[4].mxu1  ;;  %v953_v59 = vadd.f32 %v1266_v44, %v952_v52  ;;  %v1086_v60 = vadd.f32 %v1085_v53, %v1023_v51 }
  0xfe   :  { %v517_v57 = vpop.f32.mrb[5].mxu0  ;;  %v1567_v58 = vpop.f32.mrb[5].mxu1  ;;  %826 = vst [vmem:[%s1921_s2 + $0x30] sm:$0xff] %v1269_v54  ;;  %858 = vst [vmem:[%s1921_s2 + $0x130] sm:$0xff] %v1565_v55  ;;  %v1027_v7 = vmul.f32 %v1269_v54, %v1269_v54 }
  0xff   :  { %v1270_v61 = vpop.f32.mrb[6].mxu0  ;;  %v1569_v62 = vpop.f32.mrb[6].mxu1  ;;  %v1087_v1 = vadd.f32 %v1086_v60, %v1024_v56  ;;  %824 = vst [vmem:[%s1921_s2 + $0x20] sm:$0xff] %v517_v57  ;;  %v954_v2 = vadd.f32 %v953_v59, %v517_v57  ;;  %v1025_v3 = vmul.f32 %v517_v57, %v517_v57  ;;  %856 = vst [vmem:[%s1921_s2 + $0x120] sm:$0xff] %v1567_v58 }
 0x100   :  { %v520_v63 = vpop.f32.mrb[7].mxu0  ;;  %v1578_v0 = vpop.f32.mrb[7].mxu1  ;;  %827 = vst [vmem:[%s1921_s2 + $0x38] sm:$0xff] %v1270_v61  ;;  %859 = vst [vmem:[%s1921_s2 + $0x138] sm:$0xff] %v1569_v62  ;;  %v1028_v12 = vmul.f32 %v1270_v61, %v1270_v61 }
 0x101   :  { %v1088_v4 = vadd.f32 %v1087_v1, %v1025_v3  ;;  %825 = vst [vmem:[%s1921_s2 + $0x28] sm:$0xff] %v520_v63  ;;  %v955_v5 = vadd.f32 %v954_v2, %v520_v63  ;;  %v1026_v6 = vmul.f32 %v520_v63, %v520_v63  ;;  %857 = vst [vmem:[%s1921_s2 + $0x128] sm:$0xff] %v1578_v0 }
 0x103   :  { %v956_v8 = vadd.f32 %v1269_v54, %v955_v5  ;;  %v1089_v9 = vadd.f32 %v1088_v4, %v1026_v6 }
 0x105   :  { %v1273_v10 = vpop.f32.mrb[8].mxu0  ;;  %v1601_v11 = vpop.f32.mrb[8].mxu1  ;;  %v1090_v15 = vadd.f32 %v1089_v9, %v1027_v7  ;;  %v957_v16 = vadd.f32 %v1270_v61, %v956_v8 }
 0x106   :  { %v533_v13 = vpop.f32.mrb[9].mxu0  ;;  %v1603_v14 = vpop.f32.mrb[9].mxu1  ;;  %830 = vst [vmem:[%s1921_s2 + $0x50] sm:$0xff] %v1273_v10  ;;  %862 = vst [vmem:[%s1921_s2 + $0x150] sm:$0xff] %v1601_v11  ;;  %v1031_v27 = vmul.f32 %v1273_v10, %v1273_v10 }
 0x107   :  { %v1274_v17 = vpop.f32.mrb[10].mxu0  ;;  %v1605_v18 = vpop.f32.mrb[10].mxu1  ;;  %828 = vst [vmem:[%s1921_s2 + $0x40] sm:$0xff] %v533_v13  ;;  %v958_v21 = vadd.f32 %v957_v16, %v533_v13  ;;  %v1029_v22 = vmul.f32 %v533_v13, %v533_v13  ;;  %v1091_v23 = vadd.f32 %v1090_v15, %v1028_v12  ;;  %860 = vst [vmem:[%s1921_s2 + $0x140] sm:$0xff] %v1603_v14 }
 0x108   :  { %v536_v19 = vpop.f32.mrb[11].mxu0  ;;  %v1614_v20 = vpop.f32.mrb[11].mxu1  ;;  %831 = vst [vmem:[%s1921_s2 + $0x58] sm:$0xff] %v1274_v17  ;;  %863 = vst [vmem:[%s1921_s2 + $0x158] sm:$0xff] %v1605_v18  ;;  %v1032_v32 = vmul.f32 %v1274_v17, %v1274_v17 }
 0x109   :  { %v1092_v24 = vadd.f32 %v1091_v23, %v1029_v22  ;;  %829 = vst [vmem:[%s1921_s2 + $0x48] sm:$0xff] %v536_v19  ;;  %v959_v25 = vadd.f32 %v958_v21, %v536_v19  ;;  %v1030_v26 = vmul.f32 %v536_v19, %v536_v19  ;;  %861 = vst [vmem:[%s1921_s2 + $0x148] sm:$0xff] %v1614_v20 }
 0x10b   :  { %v960_v28 = vadd.f32 %v1273_v10, %v959_v25  ;;  %v1093_v29 = vadd.f32 %v1092_v24, %v1030_v26 }
 0x10d   :  { %v1277_v30 = vpop.f32.mrb[12].mxu0  ;;  %v1637_v31 = vpop.f32.mrb[12].mxu1  ;;  %v1094_v35 = vadd.f32 %v1093_v29, %v1031_v27  ;;  %v961_v36 = vadd.f32 %v1274_v17, %v960_v28 }
 0x10e   :  { %v549_v33 = vpop.f32.mrb[13].mxu0  ;;  %v1639_v34 = vpop.f32.mrb[13].mxu1  ;;  %834 = vst [vmem:[%s1921_s2 + $0x70] sm:$0xff] %v1277_v30  ;;  %866 = vst [vmem:[%s1921_s2 + $0x170] sm:$0xff] %v1637_v31  ;;  %v1035_v51 = vmul.f32 %v1277_v30, %v1277_v30 }
 0x10f   :  { %v1278_v37 = vpop.f32.mrb[14].mxu0  ;;  %v1641_v38 = vpop.f32.mrb[14].mxu1  ;;  %832 = vst [vmem:[%s1921_s2 + $0x60] sm:$0xff] %v549_v33  ;;  %v962_v42 = vadd.f32 %v961_v36, %v549_v33  ;;  %v1033_v44 = vmul.f32 %v549_v33, %v549_v33  ;;  %v1095_v46 = vadd.f32 %v1094_v35, %v1032_v32  ;;  %864 = vst [vmem:[%s1921_s2 + $0x160] sm:$0xff] %v1639_v34 }
 0x110   :  { %v552_v39 = vpop.f32.mrb[15].mxu0  ;;  %v1650_v40 = vpop.f32.mrb[15].mxu1  ;;  %835 = vst [vmem:[%s1921_s2 + $0x78] sm:$0xff] %v1278_v37  ;;  %867 = vst [vmem:[%s1921_s2 + $0x178] sm:$0xff] %v1641_v38  ;;  %v1036_v57 = vmul.f32 %v1278_v37, %v1278_v37 }
 0x111   :  { %v1096_v48 = vadd.f32 %v1095_v46, %v1033_v44  ;;  %833 = vst [vmem:[%s1921_s2 + $0x68] sm:$0xff] %v552_v39  ;;  %v963_v49 = vadd.f32 %v962_v42, %v552_v39  ;;  %v1034_v50 = vmul.f32 %v552_v39, %v552_v39  ;;  %865 = vst [vmem:[%s1921_s2 + $0x168] sm:$0xff] %v1650_v40 }
 0x113   :  { %v964_v52 = vadd.f32 %v1277_v30, %v963_v49  ;;  %v1097_v53 = vadd.f32 %v1096_v48, %v1034_v50 }
 0x115   :  { %v1281_v54 = vpop.f32.mrb[16].mxu0  ;;  %v1673_v56 = vpop.f32.mrb[16].mxu1  ;;  %v1098_v61 = vadd.f32 %v1097_v53, %v1035_v51  ;;  %v965_v63 = vadd.f32 %v1278_v37, %v964_v52 }
 0x116   :  { %v565_v59 = vpop.f32.mrb[17].mxu0  ;;  %v1675_v60 = vpop.f32.mrb[17].mxu1  ;;  %838 = vst [vmem:[%s1921_s2 + $0x90] sm:$0xff] %v1281_v54  ;;  %870 = vst [vmem:[%s1921_s2 + $0x190] sm:$0xff] %v1673_v56  ;;  %v1039_v12 = vmul.f32 %v1281_v54, %v1281_v54 }
 0x117   :  { %v1282_v1 = vpop.f32.mrb[18].mxu0  ;;  %v1677_v2 = vpop.f32.mrb[18].mxu1  ;;  %836 = vst [vmem:[%s1921_s2 + $0x80] sm:$0xff] %v565_v59  ;;  %v966_v5 = vadd.f32 %v965_v63, %v565_v59  ;;  %v1037_v6 = vmul.f32 %v565_v59, %v565_v59  ;;  %v1099_v7 = vadd.f32 %v1098_v61, %v1036_v57  ;;  %868 = vst [vmem:[%s1921_s2 + $0x180] sm:$0xff] %v1675_v60 }
 0x118   :  { %v568_v3 = vpop.f32.mrb[19].mxu0  ;;  %v1686_v4 = vpop.f32.mrb[19].mxu1  ;;  %839 = vst [vmem:[%s1921_s2 + $0x98] sm:$0xff] %v1282_v1  ;;  %871 = vst [vmem:[%s1921_s2 + $0x198] sm:$0xff] %v1677_v2  ;;  %v1040_v19 = vmul.f32 %v1282_v1, %v1282_v1 }
 0x119   :  { %v1100_v8 = vadd.f32 %v1099_v7, %v1037_v6  ;;  %837 = vst [vmem:[%s1921_s2 + $0x88] sm:$0xff] %v568_v3  ;;  %v967_v9 = vadd.f32 %v966_v5, %v568_v3  ;;  %v1038_v10 = vmul.f32 %v568_v3, %v568_v3  ;;  %869 = vst [vmem:[%s1921_s2 + $0x188] sm:$0xff] %v1686_v4 }
 0x11b   :  { %v968_v13 = vadd.f32 %v1281_v54, %v967_v9  ;;  %v1101_v15 = vadd.f32 %v1100_v8, %v1038_v10 }
 0x11d   :  { %v1285_v16 = vpop.f32.mrb[20].mxu0  ;;  %v1709_v17 = vpop.f32.mrb[20].mxu1  ;;  %v1102_v23 = vadd.f32 %v1101_v15, %v1039_v12  ;;  %v969_v24 = vadd.f32 %v1282_v1, %v968_v13 }
 0x11e   :  { %v581_v21 = vpop.f32.mrb[21].mxu0  ;;  %v1711_v22 = vpop.f32.mrb[21].mxu1  ;;  %842 = vst [vmem:[%s1921_s2 + $0xb0] sm:$0xff] %v1285_v16  ;;  %874 = vst [vmem:[%s1921_s2 + $0x1b0] sm:$0xff] %v1709_v17  ;;  %v1043_v37 = vmul.f32 %v1285_v16, %v1285_v16 }
 0x11f   :  { %v1286_v25 = vpop.f32.mrb[22].mxu0  ;;  %v1713_v26 = vpop.f32.mrb[22].mxu1  ;;  %840 = vst [vmem:[%s1921_s2 + $0xa0] sm:$0xff] %v581_v21  ;;  %v970_v29 = vadd.f32 %v969_v24, %v581_v21  ;;  %v1041_v30 = vmul.f32 %v581_v21, %v581_v21  ;;  %v1103_v32 = vadd.f32 %v1102_v23, %v1040_v19  ;;  %872 = vst [vmem:[%s1921_s2 + $0x1a0] sm:$0xff] %v1711_v22 }
 0x120   :  { %v584_v27 = vpop.f32.mrb[23].mxu0  ;;  %v1722_v28 = vpop.f32.mrb[23].mxu1  ;;  %843 = vst [vmem:[%s1921_s2 + $0xb8] sm:$0xff] %v1286_v25  ;;  %875 = vst [vmem:[%s1921_s2 + $0x1b8] sm:$0xff] %v1713_v26  ;;  %v1044_v48 = vmul.f32 %v1286_v25, %v1286_v25 }
 0x121   :  { %v1104_v33 = vadd.f32 %v1103_v32, %v1041_v30  ;;  %841 = vst [vmem:[%s1921_s2 + $0xa8] sm:$0xff] %v584_v27  ;;  %v971_v35 = vadd.f32 %v970_v29, %v584_v27  ;;  %v1042_v36 = vmul.f32 %v584_v27, %v584_v27  ;;  %873 = vst [vmem:[%s1921_s2 + $0x1a8] sm:$0xff] %v1722_v28 }
 0x123   :  { %v972_v39 = vadd.f32 %v1285_v16, %v971_v35  ;;  %v1105_v42 = vadd.f32 %v1104_v33, %v1042_v36 }
 0x125   :  { %v1289_v44 = vpop.f32.mrb[24].mxu0  ;;  %v1745_v46 = vpop.f32.mrb[24].mxu1  ;;  %v1106_v51 = vadd.f32 %v1105_v42, %v1043_v37  ;;  %v973_v52 = vadd.f32 %v1286_v25, %v972_v39 }
 0x126   :  { %v597_v49 = vpop.f32.mrb[25].mxu0  ;;  %v1747_v50 = vpop.f32.mrb[25].mxu1  ;;  %846 = vst [vmem:[%s1921_s2 + $0xd0] sm:$0xff] %v1289_v44  ;;  %878 = vst [vmem:[%s1921_s2 + $0x1d0] sm:$0xff] %v1745_v46  ;;  %v1047_v7 = vmul.f32 %v1289_v44, %v1289_v44 }
 0x127   :  { %v1290_v53 = vpop.f32.mrb[26].mxu0  ;;  %v1749_v54 = vpop.f32.mrb[26].mxu1  ;;  %844 = vst [vmem:[%s1921_s2 + $0xc0] sm:$0xff] %v597_v49  ;;  %v974_v61 = vadd.f32 %v973_v52, %v597_v49  ;;  %v1045_v63 = vmul.f32 %v597_v49, %v597_v49  ;;  %v1107_v1 = vadd.f32 %v1106_v51, %v1044_v48  ;;  %876 = vst [vmem:[%s1921_s2 + $0x1c0] sm:$0xff] %v1747_v50 }
 0x128   :  { %v600_v57 = vpop.f32.mrb[27].mxu0  ;;  %v1758_v59 = vpop.f32.mrb[27].mxu1  ;;  %847 = vst [vmem:[%s1921_s2 + $0xd8] sm:$0xff] %v1290_v53  ;;  %879 = vst [vmem:[%s1921_s2 + $0x1d8] sm:$0xff] %v1749_v54  ;;  %v1048_v13 = vmul.f32 %v1290_v53, %v1290_v53  ;;  %v1053_v51 = vmul.f32 %v1531_v43, %v1531_v43 }
 0x129   :  { %v1108_v3 = vadd.f32 %v1107_v1, %v1045_v63  ;;  %845 = vst [vmem:[%s1921_s2 + $0xc8] sm:$0xff] %v600_v57  ;;  %v975_v5 = vadd.f32 %v974_v61, %v600_v57  ;;  %v1046_v6 = vmul.f32 %v600_v57, %v600_v57  ;;  %877 = vst [vmem:[%s1921_s2 + $0x1c8] sm:$0xff] %v1758_v59 }
 0x12a   :  { %v1054_v63 = vmul.f32 %v1542_v47, %v1542_v47  ;;  %v1055_v1 = vmul.f32 %v1529_v41, %v1529_v41 }
 0x12b   :  { %v976_v8 = vadd.f32 %v1289_v44, %v975_v5  ;;  %v1109_v9 = vadd.f32 %v1108_v3, %v1046_v6  ;;  %v1056_v6 = vmul.f32 %v1533_v45, %v1533_v45 }
 0x12d   :  { %v1293_v10 = vpop.f32.mrb[28].mxu0  ;;  %v1781_v12 = vpop.f32.mrb[28].mxu1  ;;  %v1110_v19 = vadd.f32 %v1109_v9, %v1047_v7  ;;  %v977_v21 = vadd.f32 %v1290_v53, %v976_v8 }
 0x12e   :  { %v613_v15 = vpop.f32.mrb[29].mxu0  ;;  %v1783_v16 = vpop.f32.mrb[29].mxu1  ;;  %850 = vst [vmem:[%s1921_s2 + $0xf0] sm:$0xff] %v1293_v10  ;;  %882 = vst [vmem:[%s1921_s2 + $0x1f0] sm:$0xff] %v1781_v12  ;;  %v1051_v37 = vmul.f32 %v1293_v10, %v1293_v10 }
 0x12f   :  { %v1294_v23 = vpop.f32.mrb[30].mxu0  ;;  %v1785_v24 = vpop.f32.mrb[30].mxu1  ;;  %848 = vst [vmem:[%s1921_s2 + $0xe0] sm:$0xff] %v613_v15  ;;  %v978_v29 = vadd.f32 %v977_v21, %v613_v15  ;;  %v1049_v30 = vmul.f32 %v613_v15, %v613_v15  ;;  %v1111_v32 = vadd.f32 %v1110_v19, %v1048_v13  ;;  %880 = vst [vmem:[%s1921_s2 + $0x1e0] sm:$0xff] %v1783_v16 }
 0x130   :  { %v616_v25 = vpop.f32.mrb[31].mxu0  ;;  %v1794_v27 = vpop.f32.mrb[31].mxu1  ;;  %851 = vst [vmem:[%s1921_s2 + $0xf8] sm:$0xff] %v1294_v23  ;;  %883 = vst [vmem:[%s1921_s2 + $0x1f8] sm:$0xff] %v1785_v24  ;;  %v1052_v44 = vmul.f32 %v1294_v23, %v1294_v23  ;;  %v1058_v15 = vmul.f32 %v1578_v0, %v1578_v0 }
 0x131   :  { %v1112_v33 = vadd.f32 %v1111_v32, %v1049_v30  ;;  %849 = vst [vmem:[%s1921_s2 + $0xe8] sm:$0xff] %v616_v25  ;;  %v979_v35 = vadd.f32 %v978_v29, %v616_v25  ;;  %v1050_v36 = vmul.f32 %v616_v25, %v616_v25  ;;  %881 = vst [vmem:[%s1921_s2 + $0x1e8] sm:$0xff] %v1794_v27 }
 0x133   :  { %v980_v39 = vadd.f32 %v1293_v10, %v979_v35  ;;  %v1113_v42 = vadd.f32 %v1112_v33, %v1050_v36  ;;  %v1062_v33 = vmul.f32 %v1614_v20, %v1614_v20 }
 0x135   :  { %v1114_v48 = vadd.f32 %v1113_v42, %v1051_v37  ;;  %v981_v49 = vadd.f32 %v1294_v23, %v980_v39 }
 0x137   :  { %v982_v52 = vadd.f32 %v981_v49, %v1531_v43  ;;  %v1115_v53 = vadd.f32 %v1114_v48, %v1052_v44  ;;  %v1057_v43 = vmul.f32 %v1567_v58, %v1567_v58  ;;  %v1066_v49 = vmul.f32 %v1650_v40, %v1650_v40 }
 0x139   :  { %v1116_v57 = vadd.f32 %v1115_v53, %v1053_v51  ;;  %v983_v61 = vadd.f32 %v982_v52, %v1542_v47 }
 0x13b   :  { %v984_v3 = vadd.f32 %v1529_v41, %v983_v61  ;;  %v1117_v5 = vadd.f32 %v1116_v57, %v1054_v63  ;;  %v1059_v41 = vmul.f32 %v1565_v55, %v1565_v55 }
 0x13d   :  { %v1118_v7 = vadd.f32 %v1117_v5, %v1055_v1  ;;  %v985_v8 = vadd.f32 %v1533_v45, %v984_v3  ;;  %v1060_v45 = vmul.f32 %v1569_v62, %v1569_v62  ;;  %v1070_v3 = vmul.f32 %v1686_v4, %v1686_v4 }
 0x13f   :  { %v986_v9 = vadd.f32 %v985_v8, %v1567_v58  ;;  %v1119_v10 = vadd.f32 %v1118_v7, %v1056_v6  ;;  %v1061_v58 = vmul.f32 %v1603_v14, %v1603_v14 }
 0x141   :  { %v1120_v13 = vadd.f32 %v1119_v10, %v1057_v43  ;;  %v987_v47 = vadd.f32 %v986_v9, %v1578_v0 }
 0x143   :  { %v988_v19 = vadd.f32 %v1565_v55, %v987_v47  ;;  %v1121_v21 = vadd.f32 %v1120_v13, %v1058_v15  ;;  %v1063_v55 = vmul.f32 %v1601_v11, %v1601_v11  ;;  %v1074_v13 = vmul.f32 %v1722_v28, %v1722_v28 }
 0x145   :  { %v1122_v23 = vadd.f32 %v1121_v21, %v1059_v41  ;;  %v989_v25 = vadd.f32 %v1569_v62, %v988_v19  ;;  %v1064_v62 = vmul.f32 %v1605_v18, %v1605_v18 }
 0x147   :  { %v990_v29 = vadd.f32 %v989_v25, %v1603_v14  ;;  %v1123_v30 = vadd.f32 %v1122_v23, %v1060_v45  ;;  %v1065_v14 = vmul.f32 %v1639_v34, %v1639_v34  ;;  %v1078_v25 = vmul.f32 %v1758_v59, %v1758_v59 }
 0x149   :  { %v1124_v32 = vadd.f32 %v1123_v30, %v1061_v58  ;;  %v991_v0 = vadd.f32 %v990_v29, %v1614_v20 }
 0x14b   :  { %v992_v35 = vadd.f32 %v1601_v11, %v991_v0  ;;  %v1125_v36 = vadd.f32 %v1124_v32, %v1062_v33  ;;  %v1067_v11 = vmul.f32 %v1637_v31, %v1637_v31 }
 0x14d   :  { %v1126_v37 = vadd.f32 %v1125_v36, %v1063_v55  ;;  %v993_v39 = vadd.f32 %v1605_v18, %v992_v35  ;;  %v1068_v18 = vmul.f32 %v1641_v38, %v1641_v38  ;;  %v1082_v35 = vmul.f32 %v1794_v27, %v1794_v27 }
 0x14f   :  { %v994_v42 = vadd.f32 %v993_v39, %v1639_v34  ;;  %v1127_v44 = vadd.f32 %v1126_v37, %v1064_v62  ;;  %v1069_v34 = vmul.f32 %v1675_v60, %v1675_v60 }
 0x151   :  { %v1128_v48 = vadd.f32 %v1127_v44, %v1065_v14  ;;  %v995_v20 = vadd.f32 %v994_v42, %v1650_v40 }
 0x153   :  { %v996_v51 = vadd.f32 %v1637_v31, %v995_v20  ;;  %v1129_v52 = vadd.f32 %v1128_v48, %v1066_v49  ;;  %v1071_v31 = vmul.f32 %v1673_v56, %v1673_v56 }
 0x155   :  { %v1130_v53 = vadd.f32 %v1129_v52, %v1067_v11  ;;  %v997_v57 = vadd.f32 %v1641_v38, %v996_v51  ;;  %v1072_v38 = vmul.f32 %v1677_v2, %v1677_v2 }
 0x157   :  { %v998_v61 = vadd.f32 %v997_v57, %v1675_v60  ;;  %v1131_v63 = vadd.f32 %v1130_v53, %v1068_v18  ;;  %v1073_v60 = vmul.f32 %v1711_v22, %v1711_v22 }
 0x159   :  { %v1132_v1 = vadd.f32 %v1131_v63, %v1069_v34  ;;  %v999_v40 = vadd.f32 %v998_v61, %v1686_v4 }
 0x15b   :  { %v1000_v5 = vadd.f32 %v1673_v56, %v999_v40  ;;  %v1133_v6 = vadd.f32 %v1132_v1, %v1070_v3  ;;  %v1075_v56 = vmul.f32 %v1709_v17, %v1709_v17 }
 0x15d   :  { %v1134_v7 = vadd.f32 %v1133_v6, %v1071_v31  ;;  %v1001_v8 = vadd.f32 %v1677_v2, %v1000_v5  ;;  %v1076_v2 = vmul.f32 %v1713_v26, %v1713_v26 }
 0x15f   :  { %v1002_v43 = vadd.f32 %v1001_v8, %v1711_v22  ;;  %v1135_v9 = vadd.f32 %v1134_v7, %v1072_v38  ;;  %v1077_v22 = vmul.f32 %v1747_v50, %v1747_v50 }
 0x161   :  { %v1136_v10 = vadd.f32 %v1135_v9, %v1073_v60  ;;  %v1003_v4 = vadd.f32 %v1002_v43, %v1722_v28 }
 0x163   :  { %v1004_v47 = vadd.f32 %v1709_v17, %v1003_v4  ;;  %v1137_v15 = vadd.f32 %v1136_v10, %v1074_v13  ;;  %v1079_v17 = vmul.f32 %v1745_v46, %v1745_v46 }
 0x165   :  { %v1138_v41 = vadd.f32 %v1137_v15, %v1075_v56  ;;  %v1005_v19 = vadd.f32 %v1713_v26, %v1004_v47  ;;  %v1080_v26 = vmul.f32 %v1749_v54, %v1749_v54 }
 0x167   :  { %v1006_v21 = vadd.f32 %v1005_v19, %v1747_v50  ;;  %v1139_v45 = vadd.f32 %v1138_v41, %v1076_v2  ;;  %v1081_v50 = vmul.f32 %v1783_v16, %v1783_v16 }
 0x169   :  { %v1140_v23 = vadd.f32 %v1139_v45, %v1077_v22  ;;  %v1007_v28 = vadd.f32 %v1006_v21, %v1758_v59 }
 0x16b   :  { %v1008_v58 = vadd.f32 %v1745_v46, %v1007_v28  ;;  %v1141_v29 = vadd.f32 %v1140_v23, %v1078_v25  ;;  %v1083_v46 = vmul.f32 %v1781_v12, %v1781_v12 }
 0x16d   :  { %v1142_v30 = vadd.f32 %v1141_v29, %v1079_v17  ;;  %v1009_v32 = vadd.f32 %v1749_v54, %v1008_v58  ;;  %v1084_v54 = vmul.f32 %v1785_v24, %v1785_v24 }
 0x16f   :  { %v1010_v0 = vadd.f32 %v1009_v32, %v1783_v16  ;;  %v1143_v33 = vadd.f32 %v1142_v30, %v1080_v26 }
 0x171   :  { %v1144_v55 = vadd.f32 %v1143_v33, %v1081_v50  ;;  %v1011_v59 = vadd.f32 %v1010_v0, %v1794_v27 }
 0x173   :  { %v1012_v36 = vadd.f32 %v1781_v12, %v1011_v59  ;;  %v1145_v62 = vadd.f32 %v1144_v55, %v1082_v35 }
 0x175   :  { %v1013_v37 = vadd.f32 %v1785_v24, %v1012_v36  ;;  %v1146_v39 = vadd.f32 %v1145_v62, %v1083_v46 }
 0x177   :  { %v1014_v16 = vrot.slane %v1013_v37, 4  ;;  %v1147_v14 = vadd.f32 %v1146_v39, %v1084_v54 }
 0x179   :  { %v1015_v42 = vadd.f32 %v1014_v16, %v1013_v37  ;;  %v1148_v44 = vrot.slane %v1147_v14, 4 }
 0x17b   :  { %v1016_v48 = vrot.slane %v1015_v42, 2  ;;  %v1149_v20 = vadd.f32 %v1148_v44, %v1147_v14 }
 0x17d   :  { %v1017_v49 = vadd.f32 %v1016_v48, %v1015_v42  ;;  %v1150_v27 = vrot.slane %v1149_v20, 2 }
 0x17f   :  { %v1018_v11 = vrot.slane %v1017_v49, 1  ;;  %v1151_v51 = vadd.f32 %v1150_v27, %v1149_v20 }
 0x181   :  { %v1019_v52 = vadd.f32 %v1018_v11, %v1017_v49  ;;  %v1152_v18 = vrot.slane %v1151_v51, 1 }
 0x183   :  { %1020 = vst [vmem:[%s1922_s3] sm:$0x1] %v1019_v52  ;;  %v1153_v12 = vadd.f32 %v1152_v18, %v1151_v51 }
 0x185   :  { %1154 = vst [vmem:[%s1923_s4] sm:$0x1] %v1153_v12 }

</bundles_post_ra>
